<compile_context>
chip_gen: v6e
topology: v6e:2x2x1
jax: 0.10.0
libtpu: 0.0.40
codegen_flags: <defaults>
</compile_context>

<pallas_src>
import jax
import jax.numpy as jnp
from jax.experimental import pallas as pl
from jax.experimental.pallas import tpu as pltpu


def _round_up(x, m):
    return (x + m - 1) // m * m


def causal_linear_kernel(kmap_ref, kcount_ref, x_ref, w_ref, b_ref, o_ref):
    j = pl.program_id(1)
    k = pl.program_id(2)

    @pl.when(k == 0)
    def _init():
        # Output block doubles as the f32 accumulator; seed with the bias once.
        o_ref[...] = jnp.broadcast_to(b_ref[...], o_ref.shape)

    # Only accumulate over K blocks that carry any unmasked weight
    # (the causal mask makes roughly half of them all-zero).
    @pl.when(k < kcount_ref[j])
    def _accumulate():
        o_ref[...] += jnp.dot(x_ref[...], w_ref[...],
                              preferred_element_type=jnp.float32)


def causal_linear(x, weight, mask, bias, *, tm=512, tn=512, tk=512,
                  compute_dtype=jnp.bfloat16, allow_xla_fallback=True):
    """CausalLinear forward.

    x: (..., K), weight/mask: (N, K), bias: (N,) -> (..., N) float32.
    """
    *lead, K = x.shape
    N, Kw = weight.shape
    assert Kw == K and mask.shape == (N, K) and bias.shape == (N,)

    x2 = x.reshape(-1, K)
    B = x2.shape[0]

    # Small-shape fast path: a fused XLA dot beats pad + launch overhead.
    if allow_xla_fallback and max(N, K) <= 128 and B <= 256:
        w_masked = (weight * mask).astype(jnp.float32)
        y = x2.astype(jnp.float32) @ w_masked.T + bias.astype(jnp.float32)
        return y.reshape(*lead, N)

    sub = 16 if jnp.dtype(compute_dtype).itemsize < 4 else 8
    Bp0 = _round_up(B, sub)
    Np0 = _round_up(N, 128)
    Kp0 = _round_up(K, 128)

    tm = max(sub, min(_round_up(tm, sub), Bp0))
    tn = max(128, min(_round_up(tn, 128), Np0))
    tk = max(128, min(_round_up(tk, 128), Kp0))

    # v7x megacore: try to keep >= 2 output blocks along the "parallel" axes.
    if (Bp0 // tm) * (Np0 // tn) < 2:
        if tn >= 256:
            tn = _round_up(tn // 2, 128)
        elif tm >= 2 * sub:
            tm = _round_up(tm // 2, sub)

    Bp, Np, Kp = _round_up(B, tm), _round_up(N, tn), _round_up(K, tk)
    nm, nj, nk = Bp // tm, Np // tn, Kp // tk

    # Mask fold + transpose + cast fused; zero-pad only when misaligned
    # (padded K columns contribute 0, padded B/N rows are sliced off).
    w_t = (weight * mask).T.astype(compute_dtype)              # (K, N)
    if (Kp, Np) != (K, N):
        w_t = jnp.pad(w_t, ((0, Kp - K), (0, Np - N)))
    x_p = x2.astype(compute_dtype)
    if (Bp, Kp) != (B, K):
        x_p = jnp.pad(x_p, ((0, Bp - B), (0, Kp - K)))
    b_p = bias.reshape(1, N).astype(jnp.float32)
    if Np != N:
        b_p = jnp.pad(b_p, ((0, 0), (0, Np - N)))

    # Per output-column block j: which K blocks hold any unmasked weight.
    active = (w_t.reshape(nk, tk, nj, tn) != 0).any(axis=(1, 3)).T   # (nj, nk)
    order = jnp.argsort(jnp.logical_not(active), axis=1).astype(jnp.int32)
    kcount = jnp.sum(active, axis=1).astype(jnp.int32)               # (nj,)
    last = jnp.take_along_axis(order, jnp.maximum(kcount - 1, 0)[:, None], axis=1)
    steps = jnp.arange(nk, dtype=jnp.int32)[None, :]
    # Skipped steps repeat the last valid block index -> redundant DMA elided.
    kmap = jnp.where(steps < kcount[:, None], order, last).astype(jnp.int32)

    out = pl.pallas_call(
        causal_linear_kernel,
        out_shape=jax.ShapeDtypeStruct((Bp, Np), jnp.float32),
        grid_spec=pltpu.PrefetchScalarGridSpec(
            num_scalar_prefetch=2,                       # kmap, kcount
            grid=(nm, nj, nk),
            in_specs=[
                pl.BlockSpec((tm, tk), lambda i, j, k, km, kc: (i, km[j, k])),
                pl.BlockSpec((tk, tn), lambda i, j, k, km, kc: (km[j, k], j)),
                pl.BlockSpec((1, tn), lambda i, j, k, km, kc: (0, j)),
            ],
            out_specs=pl.BlockSpec((tm, tn), lambda i, j, k, km, kc: (i, j)),
        ),
        compiler_params=pltpu.CompilerParams(
            dimension_semantics=("parallel", "parallel", "arbitrary"),
            vmem_limit_bytes=48 * 1024 * 1024,
        ),
    )(kmap, kcount, x_p, w_t, b_p)

    return out[:B, :N].reshape(*lead, N)


def _make_problem(key, batch, in_features, out_features):
    k_w, k_b, k_x = jax.random.split(key, 3)
    # adjacency[i, j] == 1 means variable i causes variable j.
    adjacency = jnp.tril(jnp.ones((in_features, out_features), jnp.float32), k=-1)
    mask = adjacency.T.astype(jnp.float32)                 # (out, in)
    weight = jax.random.normal(k_w, (out_features, in_features), jnp.float32) * mask
    bias = 0.1 * jax.random.normal(k_b, (out_features,), jnp.float32)
    x = jax.random.normal(k_x, (batch, in_features), jnp.float32)
    return x, weight, mask, bias


def _matched_reference(x, weight, mask, bias, compute_dtype):
    # Same input quantization as the kernel, full-precision f32 accumulation.
    xq = x.astype(compute_dtype).astype(jnp.float32)
    wq = (weight * mask).astype(compute_dtype).astype(jnp.float32)
    return jnp.dot(xq, wq.T, precision=jax.lax.Precision.HIGHEST) + bias


if __name__ == "__main__":
    key = jax.random.PRNGKey(0)
    k1, k2, k3, k4 = jax.random.split(key, 4)

    # Case 1: small module-like shapes, forced through the Pallas path (bf16).
    x, w, m, b = _make_problem(k1, batch=8, in_features=32, out_features=32)
    y = causal_linear(x, w, m, b, allow_xla_fallback=False)
    jax.block_until_ready(y)
    y_ref = _matched_reference(x, w, m, b, jnp.bfloat16)
    assert y.shape == y_ref.shape
    assert jnp.allclose(y, y_ref, atol=2e-3, rtol=2e-3)

    # Case 2: non-aligned shapes with several K/N blocks -> exercises padding,
    # the scalar-prefetched triangular block-skip map and direct o_ref accum.
    x2, w2, m2, b2 = _make_problem(k2, batch=100, in_features=384, out_features=320)
    y2 = causal_linear(x2, w2, m2, b2, tm=128, tn=128, tk=128,
                       allow_xla_fallback=False)
    jax.block_until_ready(y2)
    y2_ref = _matched_reference(x2, w2, m2, b2, jnp.bfloat16)
    assert y2.shape == y2_ref.shape
    assert jnp.allclose(y2, y2_ref, atol=2e-3, rtol=2e-3)

    # Case 3: float32 compute path (exact module numerics) on odd shapes.
    x3, w3, m3, b3 = _make_problem(k3, batch=10, in_features=48, out_features=40)
    y3 = causal_linear(x3, w3, m3, b3, compute_dtype=jnp.float32,
                       allow_xla_fallback=False)
    jax.block_until_ready(y3)
    y3_ref = jnp.dot(x3, (w3 * m3).T, precision=jax.lax.Precision.HIGHEST) + b3
    assert y3.shape == y3_ref.shape
    assert jnp.allclose(y3, y3_ref, atol=1e-3, rtol=1e-3)

    # Case 4: tiny problem takes the small-shape XLA fast path (default).
    x4, w4, m4, b4 = _make_problem(k4, batch=4, in_features=16, out_features=16)
    y4 = causal_linear(x4, w4, m4, b4)
    jax.block_until_ready(y4)
    y4_ref = x4.astype(jnp.float32) @ (w4 * m4).astype(jnp.float32).T + b4
    assert jnp.allclose(y4, y4_ref, atol=1e-5, rtol=1e-5)

    print("KERNEL_OK")
</pallas_src>

<mosaic_0001>
module attributes {stable_mosaic.version = 11 : i64} {
  func.func @causal_linear_kernel(%arg0: i32, %arg1: i32, %arg2: i32, %arg3: memref<1x1xi32, #tpu.memory_space<smem>>, %arg4: memref<1xi32, #tpu.memory_space<smem>>, %arg5: memref<16x128xbf16, #tpu.memory_space<vmem>>, %arg6: memref<128x128xbf16, #tpu.memory_space<vmem>>, %arg7: memref<1x128xf32, #tpu.memory_space<vmem>>, %arg8: memref<16x128xf32, #tpu.memory_space<vmem>>) attributes {dimension_semantics = [#tpu.dimension_semantics<parallel>, #tpu.dimension_semantics<parallel>, #tpu.dimension_semantics<arbitrary>], iteration_bounds = array<i64: 1, 1, 1>, scalar_prefetch = 2 : i64, scratch_operands = 0 : i64, tpu.core_type = #tpu.core_type<tc>, window_params = [{transform_indices = @transform_0, window_bounds = array<i64: 16, 128>}, {transform_indices = @transform_1, window_bounds = array<i64: 128, 128>}, {transform_indices = @transform_2, window_bounds = array<i64: 1, 128>}, {transform_indices = @transform_3, window_bounds = array<i64: 16, 128>}]} {
    %c0_i32 = arith.constant 0 : i32
    %0 = arith.cmpi eq, %arg2, %c0_i32 : i32
    %1 = arith.extui %0 : i1 to i32
    %c0_i32_0 = arith.constant 0 : i32
    %2 = arith.cmpi ne, %1, %c0_i32_0 : i32
    scf.if %2 {
      %c0 = arith.constant 0 : index
      %c0_2 = arith.constant 0 : index
      %8 = vector.load %arg7[%c0, %c0_2] : memref<1x128xf32, #tpu.memory_space<vmem>>, vector<1x128xf32>
      %9 = vector.shape_cast %8 : vector<1x128xf32> to vector<1x128xf32>
      %10 = vector.broadcast %9 : vector<1x128xf32> to vector<16x128xf32>
      %c0_3 = arith.constant 0 : index
      %c0_4 = arith.constant 0 : index
      %11 = vector.load %arg8[%c0_3, %c0_4] : memref<16x128xf32, #tpu.memory_space<vmem>>, vector<16x128xf32>
      tpu.vector_store %arg8[%c0_3, %c0_4], %10 {strides = array<i32>} : memref<16x128xf32, #tpu.memory_space<vmem>>, vector<16x128xf32>,
    } else {
    }
    %3 = arith.index_cast %arg1 : i32 to index
    %4 = memref.load %arg4[%3] : memref<1xi32, #tpu.memory_space<smem>>
    %5 = arith.cmpi slt, %arg2, %4 : i32
    %6 = arith.extui %5 : i1 to i32
    %c0_i32_1 = arith.constant 0 : i32
    %7 = arith.cmpi ne, %6, %c0_i32_1 : i32
    scf.if %7 {
      %c0 = arith.constant 0 : index
      %c0_2 = arith.constant 0 : index
      %8 = vector.load %arg8[%c0, %c0_2] : memref<16x128xf32, #tpu.memory_space<vmem>>, vector<16x128xf32>
      %c0_3 = arith.constant 0 : index
      %c0_4 = arith.constant 0 : index
      %9 = vector.load %arg5[%c0_3, %c0_4] : memref<16x128xbf16, #tpu.memory_space<vmem>>, vector<16x128xbf16>
      %c0_5 = arith.constant 0 : index
      %c0_6 = arith.constant 0 : index
      %10 = vector.load %arg6[%c0_5, %c0_6] : memref<128x128xbf16, #tpu.memory_space<vmem>>, vector<128x128xbf16>
      %cst = arith.constant dense<0.000000e+00> : vector<16x128xf32>
      %11 = tpu.matmul %9, %10, %cst {dimension_numbers = #tpu.dot_dimension_numbers<[1], [0], [0], [1], [0, 0, 1, 1], [], []>} : vector<16x128xbf16>, vector<128x128xbf16>, vector<16x128xf32> -> vector<16x128xf32>
      %12 = arith.addf %8, %11 : vector<16x128xf32>
      %c0_7 = arith.constant 0 : index
      %c0_8 = arith.constant 0 : index
      %13 = vector.load %arg8[%c0_7, %c0_8] : memref<16x128xf32, #tpu.memory_space<vmem>>, vector<16x128xf32>
      tpu.vector_store %arg8[%c0_7, %c0_8], %12 {strides = array<i32>} : memref<16x128xf32, #tpu.memory_space<vmem>>, vector<16x128xf32>,
    } else {
    }
    return
  }
  func.func @transform_0(%arg0: i32, %arg1: i32, %arg2: i32, %arg3: memref<1x1xi32, #tpu.memory_space<smem>>, %arg4: memref<1xi32, #tpu.memory_space<smem>>) -> (i32, i32) {
    %0 = arith.index_cast %arg1 : i32 to index
    %1 = arith.index_cast %arg2 : i32 to index
    %2 = memref.load %arg3[%0, %1] : memref<1x1xi32, #tpu.memory_space<smem>>
    %c0_i32 = arith.constant 0 : i32
    return %arg0, %2 : i32, i32
  }
  func.func @transform_1(%arg0: i32, %arg1: i32, %arg2: i32, %arg3: memref<1x1xi32, #tpu.memory_space<smem>>, %arg4: memref<1xi32, #tpu.memory_space<smem>>) -> (i32, i32) {
    %0 = arith.index_cast %arg1 : i32 to index
    %1 = arith.index_cast %arg2 : i32 to index
    %2 = memref.load %arg3[%0, %1] : memref<1x1xi32, #tpu.memory_space<smem>>
    %c0_i32 = arith.constant 0 : i32
    return %2, %arg1 : i32, i32
  }
  func.func @transform_2(%arg0: i32, %arg1: i32, %arg2: i32, %arg3: memref<1x1xi32, #tpu.memory_space<smem>>, %arg4: memref<1xi32, #tpu.memory_space<smem>>) -> (i32, i32) {
    %c0_i32 = arith.constant 0 : i32
    %c0_i32_0 = arith.constant 0 : i32
    return %c0_i32, %arg1 : i32, i32
  }
  func.func @transform_3(%arg0: i32, %arg1: i32, %arg2: i32, %arg3: memref<1x1xi32, #tpu.memory_space<smem>>, %arg4: memref<1xi32, #tpu.memory_space<smem>>) -> (i32, i32) {
    %c0_i32 = arith.constant 0 : i32
    return %arg0, %arg1 : i32, i32
  }
}

</mosaic_0001>

<bundles_post_ra>
// kernel: tpu_custom_call.1
= control target key start
LH: loop header
LB: loop body
LE: loop exit
PB: predicated region body
PF: predicated region fallthrough
CT: control target
= control target key end

     0   :  { %12 = vsyncpa [#allocation6], 0  ;;  %s434_s0 = inlined_call_operand.<no memory space> [shape: s32[1,1], index: 0, kind: input, shape index: {}]   ;;  %s435_s1 = inlined_call_operand.<no memory space> [shape: s32[1], index: 1, kind: input, shape index: {}]   ;;  %s436_s2 = inlined_call_operand.hbm [shape: bf16[16,128], index: 2, kind: input, shape index: {}]   ;;  %s437_s3 = inlined_call_operand.hbm [shape: bf16[128,128], index: 3, kind: input, shape index: {}]   ;;  %s438_s4 = inlined_call_operand.vmem [shape: f32[1,128], index: 4, kind: input, shape index: {}]   ;;  %s439_s5 = inlined_call_operand.hbm [shape: f32[16,128], index: 5, kind: output, shape index: {}]  }
   0x1   :  { %13 = vsyncpa [#allocation9], 0 }
   0x2   :  { %14 = vsyncpa [#allocation7], 0  ;;  %s229_s20 = sshll.u32 %s434_s0, 6  ;;  %s362_s24 = smov [#allocation5]  }
   0x3   :  { %s25_s23 = scalar_lea.hbm %s436_s2, %s229_s20  ;;  %s26_s25 = sshll.u32 %s362_s24, 4  ;;  %s27_s25 = int_to_ptr.vmem [resolvable:$true] %s26_s25 }
   0x4   :  { %s244_s28 = sshll.u32 %s434_s0, 10  ;;  %s292_s29 = scalar_lea.hbm %s25_s23, 128 }
   0x5   :  { %p293_p0 = scmp.ne.s32.totalorder %s25_s23, %s292_s29  ;;  %s294_s7 = scalar_lea.hbm %s436_s2, 128 }
   0x6   :  { %p295_p1 = scmp.lt.s32.totalorder %s25_s23, %s436_s2  ;;  %p296_p2 = scmp.lt.s32.totalorder %s294_s7, %s292_s29 }
   0x8   :  { %p297_p3 = por %p296_p2, %p295_p1 }
   0xa   :  { %p298_p4 = pnand %p297_p3, %p293_p0 }
   0xc   :  { %301 = shalt.err (!%p298_p4)
}
   0xd   :  { %s302_s10 = scalar_lea.vmem %s27_s25, 128  ;;  %p307_p6 = scmp.lt.s32.totalorder %s27_s25, %s27_s25 }
   0xe   :  { %p303_p5 = scmp.ne.s32.totalorder %s27_s25, %s302_s10  ;;  %p308_p7 = scmp.lt.s32.totalorder %s302_s10, %s302_s10 }
  0x10   :  { %p309_p8 = por %p308_p7, %p307_p6 }
  0x12   :  { %p310_p9 = pnand %p309_p8, %p303_p5 }
  0x14   :  { %313 = shalt.err (!%p310_p9)
}
  0x15   :  { %s363_s0 = smov 64   ;;  %s364_s11 = smov 4  }
  0x16   :  { %32 = dma.hbm_to_vmem [thread:$0]  %s25_s23, 128, %s27_s25, [#allocation6], %s363_s0, %s363_s0, %s364_s11  }
  0x17   :  { %s44_s14 = scalar_lea.hbm %s437_s3, %s244_s28  ;;  %s365_s15 = smov [#allocation8]  }
  0x18   :  { %s45_s2 = sshll.u32 %s365_s15, 4  ;;  %s314_s16 = scalar_lea.hbm %s44_s14, 1024  ;;  %s46_s2 = int_to_ptr.vmem [resolvable:$true] %s45_s2 }
  0x19   :  { %p315_p10 = scmp.ne.s32.totalorder %s44_s14, %s314_s16  ;;  %s316_s19 = scalar_lea.hbm %s437_s3, 1024 }
  0x1a   :  { %p317_p11 = scmp.lt.s32.totalorder %s44_s14, %s437_s3  ;;  %p318_p12 = scmp.lt.s32.totalorder %s316_s19, %s314_s16 }
  0x1c   :  { %p319_p13 = por %p318_p12, %p317_p11 }
  0x1e   :  { %p320_p0 = pnand %p319_p13, %p315_p10 }
  0x20   :  { %323 = shalt.err (!%p320_p0)
}
  0x21   :  { %s324_s22 = scalar_lea.vmem %s46_s2, 1024  ;;  %p329_p2 = scmp.lt.s32.totalorder %s46_s2, %s46_s2 }
  0x22   :  { %p325_p1 = scmp.ne.s32.totalorder %s46_s2, %s324_s22  ;;  %p330_p3 = scmp.lt.s32.totalorder %s324_s22, %s324_s22 }
  0x24   :  { %p331_p4 = por %p330_p3, %p329_p2 }
  0x26   :  { %p332_p5 = pnand %p331_p4, %p325_p1 }
  0x28   :  { %335 = shalt.err (!%p332_p5)
}
  0x29   :  { %51 = dma.hbm_to_vmem [thread:$0]  %s44_s14, 1024, %s46_s2, [#allocation9], %s363_s0, %s363_s0, %s364_s11  }
  0x2a   :  { %356 = dma.done.wait [#allocation6], 128  }
  0x2b   :  { %357 = vsyncadd [#allocation6], 4294967168 }
  0x2c   :  { %358 = dma.done.wait [#allocation9], 1024  }
  0x2d   :  { %359 = vsyncadd [#allocation9], 4294966272  ;;  %v232_v0 = vld [vmem:[%s438_s4] ss:$0 sm:$0xff]  ;;  %p234_p6 = scmp.le.s32.totalorder %s435_s1, 0 }
  0x2e   :  { %81 = vst [vmem:[#allocation10] sm:$0xff] %v232_v0  ;;  %82 = vst [vmem:[#allocation10 + $0x8] sm:$0xff] %v232_v0 }
  0x2f   :  { %87 = sbr.rel (%p234_p6) target bundleno = 285 (0x11d), region = 29 }
  0x34   :  { %v283_v1 = vld [vmem:[#allocation8 + $0x38] sm:$0xff]   ;;  %v366_v2 = vmov 0.0   ;;  %v284_v3 = vld [vmem:[#allocation8 + $0x30] sm:$0xff]   ;;  %vm367_vm0 = vmmov 0   ;;  %v285_v4 = vld [vmem:[#allocation8 + $0x28] sm:$0xff]  }
  0x35   :  { %254 = vmatprep.subr.bf16.mxu0 %v366_v2  ;;  %270 = vmatprep.mubr.msk.bf16.mxu0 %vm367_vm0, %v366_v2  ;;  %v286_v5 = vld [vmem:[#allocation8 + $0x20] sm:$0xff]   ;;  %v287_v6 = vld [vmem:[#allocation8 + $0x18] sm:$0xff]   ;;  %v288_v7 = vld [vmem:[#allocation8 + $0x10] sm:$0xff]  }
  0x36   :  { %255 = vmatpush3.bf16.msra.mxu0 %v283_v1  ;;  %v289_v8 = vld [vmem:[#allocation8 + $0x8] sm:$0xff]   ;;  %v290_v9 = vld [vmem:[#allocation8] sm:$0xff]   ;;  %v291_v10 = vld [vmem:[#allocation5] sm:$0xff]  }
  0x37   :  { %256 = vmatprep.subr.bf16.mxu0 %v366_v2  ;;  %v88_v11 = vld [vmem:[#allocation10] sm:$0xff]  ;;  %v89_v15 = vld [vmem:[#allocation10 + $0x8] sm:$0xff] }
  0x3a   :  { %257 = vmatpush3.bf16.msra.mxu0 %v284_v3 }
  0x3b   :  { %258 = vmatprep.subr.bf16.mxu0 %v366_v2 }
  0x3e   :  { %259 = vmatpush3.bf16.msra.mxu0 %v285_v4 }
  0x3f   :  { %260 = vmatprep.subr.bf16.mxu0 %v366_v2 }
  0x42   :  { %261 = vmatpush3.bf16.msra.mxu0 %v286_v5 }
  0x43   :  { %262 = vmatprep.subr.bf16.mxu0 %v366_v2 }
  0x46   :  { %263 = vmatpush3.bf16.msra.mxu0 %v287_v6 }
  0x47   :  { %264 = vmatprep.subr.bf16.mxu0 %v366_v2 }
  0x4a   :  { %265 = vmatpush3.bf16.msra.mxu0 %v288_v7 }
  0x4b   :  { %266 = vmatprep.subr.bf16.mxu0 %v366_v2 }
  0x4e   :  { %267 = vmatpush3.bf16.msra.mxu0 %v289_v8 }
  0x4f   :  { %268 = vmatprep.subr.bf16.mxu0 %v366_v2 }
  0x52   :  { %269 = vmatpush3.bf16.msra.mxu0 %v290_v9 }
  0x55   :  { %271 = vmatmul.mubr.bf16.vlgmr.msra.gmra.mxu0 %v291_v10 }
 0x115   :  { %v196_v12 = vpop.f32.mrf.mxu0 }
 0x116   :  { %v203_v13 = vadd.f32 %v196_v12, %v88_v11 }
 0x117   :  { %v272_v14 = vpop.f32.mrf.mxu0 }
 0x118   :  { %205 = vst [vmem:[#allocation10] sm:$0xff] %v203_v13 }
 0x119   :  { %v199_v16 = vpop.f32.mrf.mxu0 }
 0x11a   :  { %v204_v17 = vadd.f32 %v199_v16, %v89_v15 }
 0x11b   :  { %v273_v18 = vpop.f32.mrf.mxu0 }
 0x11c   :  { %206 = vst [vmem:[#allocation10 + $0x8] sm:$0xff] %v204_v17 }
 0x11d PF:  { %s368_s1 = smov [#allocation10]  }
 0x11e   :  { %s212_s4 = sshll.u32 %s368_s1, 4  ;;  %s213_s4 = int_to_ptr.vmem [resolvable:$true] %s212_s4 }
 0x11f   :  { %s336_s26 = scalar_lea.vmem %s213_s4, 256  ;;  %p341_p8 = scmp.lt.s32.totalorder %s213_s4, %s213_s4 }
 0x120   :  { %p337_p7 = scmp.ne.s32.totalorder %s213_s4, %s336_s26  ;;  %p342_p9 = scmp.lt.s32.totalorder %s336_s26, %s336_s26 }
 0x122   :  { %p343_p10 = por %p342_p9, %p341_p8 }
 0x124   :  { %p344_p11 = pnand %p343_p10, %p337_p7 }
 0x126   :  { %347 = shalt.err (!%p344_p11)
}
 0x127   :  { %s369_s27 = smov 128   ;;  %s370_s28 = smov 8  }
 0x128   :  { %218 = dma.vmem_to_hbm [thread:$0]  %s213_s4, 256, %s439_s5, [#allocation7], %s369_s27, %s369_s27, %s370_s28  }
 0x129   :  { %360 = dma.done.wait [#allocation7], 256  }
 0x12a   :  { %361 = vsyncadd [#allocation7], 4294967040 }
 0x12b   :  { %222 = vsyncpa [#allocation6], 1 }
 0x12c   :  { %223 = vsyncpa [#allocation9], 1 }
 0x12d   :  { %224 = vsyncpa [#allocation7], 1 }

</bundles_post_ra>
